<compile_context>
chip_gen: v5e
topology: v5e:2x2
jax: 0.10.0
libtpu: 0.0.40
codegen_flags: <defaults>
</compile_context>

<pallas_src>
import functools

import jax
import jax.numpy as jnp
from jax.experimental import pallas as pl
from jax.experimental.pallas import tpu as pltpu


_MIN_TILE_ROWS = 128  # keep >= ~8 grid steps once rows exceeds 8 * this


def _cdiv(a: int, b: int) -> int:
    return -(-a // b)


def _round_up(a: int, m: int) -> int:
    return ((a + m - 1) // m) * m


def _rms_norm_kernel(x_ref, w_ref, o_ref, *, eps: float, inv_dim: float):
    # x_ref: (tm, D) row tile in the I/O dtype; w_ref: (1, D) weight row
    # (resident across the whole grid).
    x = x_ref[...]
    xf = x.astype(jnp.float32)
    # sum * (1/D) instead of mean: cross-lane sum stays on the XLU slot, the
    # constant multiply co-issues on the VALU, no f32 divide on the hot path.
    ms = jnp.sum(xf * xf, axis=-1, keepdims=True) * inv_dim      # (tm, 1) f32
    inv = jax.lax.rsqrt(ms + eps)                                # (tm, 1) f32
    # Epilogue in the I/O dtype: normalized activation is downcast before the
    # weight multiply (HF/TT Mistral parity), packed bf16 VALU on v6e/v7x.
    o_ref[...] = ((x * inv.astype(x.dtype)) * w_ref[...]).astype(o_ref.dtype)


def _vmem_limit_bytes() -> int:
    """Generation-aware scoped-VMEM limit (v5e/v6e: 128 MiB phys, v7x: 64 MiB)."""
    try:
        cap = pltpu.get_tpu_info().vmem_capacity_bytes
    except Exception:
        cap = 64 << 20  # conservative fallback (v7x-sized)
    # Leave headroom for compiler-internal scratch; cap below 100 MiB.
    return int(min(cap * 3 // 4, 100 << 20))


def _pick_row_tile(rows: int, dim: int, itemsize: int, vmem_limit: int) -> int:
    """Largest sublane-friendly row tile that fits VMEM, with a grid-step floor."""
    # Per-row VMEM footprint: double-buffered in + out tiles in the I/O dtype
    # plus one f32 (tm, D) temporary from the sum-of-squares upcast.
    per_row = 4 * dim * itemsize + 4 * dim
    budget = (vmem_limit * 3) // 4          # ~75% utilization of the scoped limit
    tm = budget // max(per_row, 1)
    tm = max(16, min(int(tm), 1024))        # diminishing returns past ~1024 rows
    tm = (tm // 16) * 16                    # multiple of 16: full bf16 sublane packing
    # Keep at least ~8 grid steps (>= 2 per TensorCore on v7x) once rows is
    # large enough to matter, so the software pipeline and the megacore split
    # both have work to overlap.
    if rows >= 8 * _MIN_TILE_ROWS:
        tm = min(tm, max(_MIN_TILE_ROWS, _round_up(_cdiv(rows, 8), 16)))
    if rows <= tm:
        # Single block covering every row; block dim == full array dim is always
        # a legal block shape (no padding needed even if rows % 8 != 0).
        return rows
    return tm


def rms_norm(x: jax.Array, weight: jax.Array, eps: float = 1e-6,
             *, row_tile: int | None = None) -> jax.Array:
    """RMSNorm over the last axis of x, scaled by `weight` (shape [hidden])."""
    orig_shape = x.shape
    dim = orig_shape[-1]
    assert weight.shape == (dim,), f"weight shape {weight.shape} != ({dim},)"

    x2d = x.reshape(-1, dim)                 # (rows, D): metadata-only reshape
    rows = x2d.shape[0]

    # Keep the lane (last) axis dense: pad hidden to a multiple of 128 so the
    # output store is an unmasked full-lane vst.  Zero padding does not perturb
    # the sum of squares and the true 1/dim is used for the mean.  For
    # 4096-class model dims this is a no-op.
    dim_p = _round_up(dim, 128)
    w2d = weight.astype(x.dtype).reshape(1, dim)   # resident, tiny, I/O dtype
    if dim_p != dim:
        x2d = jnp.pad(x2d, ((0, 0), (0, dim_p - dim)))
        w2d = jnp.pad(w2d, ((0, 0), (0, dim_p - dim)))

    vmem_limit = _vmem_limit_bytes()
    if row_tile is not None:
        # Validate the manual override: must be a multiple of 8 (sublane) or
        # cover all rows, otherwise lowering rejects the block shape.
        tm = rows if row_tile >= rows else max(8, (int(row_tile) // 8) * 8)
    else:
        tm = _pick_row_tile(rows, dim_p, x.dtype.itemsize, vmem_limit)

    out = pl.pallas_call(
        functools.partial(_rms_norm_kernel, eps=float(eps), inv_dim=1.0 / dim),
        out_shape=jax.ShapeDtypeStruct((rows, dim_p), x.dtype),
        grid_spec=pltpu.PrefetchScalarGridSpec(
            num_scalar_prefetch=0,
            grid=(pl.cdiv(rows, tm),),            # partial trailing row-block is
            in_specs=[                            # handled by masked writeback
                pl.BlockSpec((tm, dim_p), lambda i: (i, 0)),   # row tile of x
                pl.BlockSpec((1, dim_p), lambda i: (0, 0)),    # weight (resident)
            ],
            out_specs=pl.BlockSpec((tm, dim_p), lambda i: (i, 0)),
        ),
        compiler_params=pltpu.CompilerParams(
            dimension_semantics=("parallel",),    # lets v7x split rows across TCs
            vmem_limit_bytes=vmem_limit,
        ),
    )(x2d, w2d)

    if dim_p != dim:
        out = out[:, :dim]
    return out.reshape(orig_shape)


def _reference_rms_norm(x, weight, eps):
    xf = x.astype(jnp.float32)
    ms = jnp.mean(xf * xf, axis=-1, keepdims=True)
    normed = (xf * jax.lax.rsqrt(ms + eps)).astype(x.dtype)
    return normed * weight.astype(x.dtype)


if __name__ == "__main__":
    key = jax.random.PRNGKey(0)
    kx, kw, kx2, kx3 = jax.random.split(key, 4)

    batch, seq, hidden = 2, 8, 32
    eps = 1e-6

    # Activation in bfloat16 (matches the TT module's BFLOAT16 tensors).
    x = jax.random.normal(kx, (batch, seq, hidden), dtype=jnp.float32).astype(jnp.bfloat16)
    # Deterministic synthetic weight (module loads a [hidden] bf16 weight from cache).
    weight = (1.0 + 0.01 * jax.random.normal(kw, (hidden,), dtype=jnp.float32)).astype(jnp.bfloat16)

    out = jax.block_until_ready(rms_norm(x, weight, eps))
    ref = _reference_rms_norm(x, weight, eps)
    assert out.shape == x.shape and out.dtype == x.dtype
    err = jnp.max(jnp.abs(out.astype(jnp.float32) - ref.astype(jnp.float32)))
    assert float(err) < 5e-2, f"max abs err {float(err)}"

    # Exercise the partial-trailing-row-block path: rows (3*7=21) is not a
    # multiple of the row tile, grid has >1 step, masked stores cover the tail.
    x_odd = jax.random.normal(kx2, (3, 7, hidden), dtype=jnp.float32).astype(jnp.bfloat16)
    out_odd = jax.block_until_ready(rms_norm(x_odd, weight, eps, row_tile=16))
    ref_odd = _reference_rms_norm(x_odd, weight, eps)
    err_odd = jnp.max(jnp.abs(out_odd.astype(jnp.float32) - ref_odd.astype(jnp.float32)))
    assert out_odd.shape == x_odd.shape and float(err_odd) < 5e-2, \
        f"max abs err (odd rows) {float(err_odd)}"

    # Exercise the lane-dense path (hidden already a multiple of 128) and the
    # auto tile picker with several grid steps.
    hidden2 = 128
    x_big = jax.random.normal(kx3, (4, 64, hidden2), dtype=jnp.float32).astype(jnp.bfloat16)
    w_big = (1.0 + 0.01 * jax.random.normal(kw, (hidden2,), dtype=jnp.float32)).astype(jnp.bfloat16)
    out_big = jax.block_until_ready(rms_norm(x_big, w_big, eps, row_tile=64))
    ref_big = _reference_rms_norm(x_big, w_big, eps)
    err_big = jnp.max(jnp.abs(out_big.astype(jnp.float32) - ref_big.astype(jnp.float32)))
    assert out_big.shape == x_big.shape and float(err_big) < 5e-2, \
        f"max abs err (big) {float(err_big)}"

    print("KERNEL_OK")
</pallas_src>

<mosaic_0001>
module attributes {stable_mosaic.version = 11 : i64} {
  func.func @_rms_norm_kernel(%arg0: i32, %arg1: memref<16x128xbf16, #tpu.memory_space<vmem>>, %arg2: memref<1x128xbf16, #tpu.memory_space<vmem>>, %arg3: memref<16x128xbf16, #tpu.memory_space<vmem>>) attributes {dimension_semantics = [#tpu.dimension_semantics<parallel>], iteration_bounds = array<i64: 1>, scalar_prefetch = 0 : i64, scratch_operands = 0 : i64, tpu.core_type = #tpu.core_type<tc>, window_params = [{transform_indices = @transform_0, window_bounds = array<i64: 16, 128>}, {pipeline_mode = #tpu.pipeline_mode<synchronous>, transform_indices = @transform_1, window_bounds = array<i64: 1, 128>}, {transform_indices = @transform_2, window_bounds = array<i64: 16, 128>}]} {
    %c0 = arith.constant 0 : index
    %c0_0 = arith.constant 0 : index
    %0 = vector.load %arg1[%c0, %c0_0] : memref<16x128xbf16, #tpu.memory_space<vmem>>, vector<16x128xbf16>
    %1 = arith.extf %0 : vector<16x128xbf16> to vector<16x128xf32>
    %2 = arith.mulf %1, %1 : vector<16x128xf32>
    %cst = arith.constant dense<0.000000e+00> : vector<16xf32>
    %3 = vector.multi_reduction <add>, %2, %cst [1] : vector<16x128xf32> to vector<16xf32>
    %4 = vector.shape_cast %3 : vector<16xf32> to vector<16x1xf32>
    %cst_1 = arith.constant 3.125000e-02 : f32
    %5 = vector.broadcast %cst_1 : f32 to vector<16x1xf32>
    %6 = arith.mulf %4, %5 : vector<16x1xf32>
    %cst_2 = arith.constant 9.99999997E-7 : f32
    %7 = vector.broadcast %cst_2 : f32 to vector<16x1xf32>
    %8 = arith.addf %6, %7 : vector<16x1xf32>
    %9 = math.rsqrt %8 : vector<16x1xf32>
    %10 = arith.truncf %9 : vector<16x1xf32> to vector<16x1xbf16>
    %11 = vector.broadcast %10 : vector<16x1xbf16> to vector<16x128xbf16>
    %12 = arith.mulf %0, %11 : vector<16x128xbf16>
    %c0_3 = arith.constant 0 : index
    %c0_4 = arith.constant 0 : index
    %13 = vector.load %arg2[%c0_3, %c0_4] : memref<1x128xbf16, #tpu.memory_space<vmem>>, vector<1x128xbf16>
    %14 = vector.broadcast %13 : vector<1x128xbf16> to vector<16x128xbf16>
    %15 = arith.mulf %12, %14 : vector<16x128xbf16>
    %c0_5 = arith.constant 0 : index
    %c0_6 = arith.constant 0 : index
    %16 = vector.load %arg3[%c0_5, %c0_6] : memref<16x128xbf16, #tpu.memory_space<vmem>>, vector<16x128xbf16>
    tpu.vector_store %arg3[%c0_5, %c0_6], %15 {strides = array<i32>} : memref<16x128xbf16, #tpu.memory_space<vmem>>, vector<16x128xbf16>,
    return
  }
  func.func @transform_0(%arg0: i32) -> (i32, i32) {
    %c0_i32 = arith.constant 0 : i32
    %c0_i32_0 = arith.constant 0 : i32
    return %arg0, %c0_i32 : i32, i32
  }
  func.func @transform_1(%arg0: i32) -> (i32, i32) {
    %c0_i32 = arith.constant 0 : i32
    %c0_i32_0 = arith.constant 0 : i32
    %c0_i32_1 = arith.constant 0 : i32
    return %c0_i32, %c0_i32_0 : i32, i32
  }
  func.func @transform_2(%arg0: i32) -> (i32, i32) {
    %c0_i32 = arith.constant 0 : i32
    %c0_i32_0 = arith.constant 0 : i32
    return %arg0, %c0_i32 : i32, i32
  }
}

</mosaic_0001>

<bundles_post_ra>
// kernel: tpu_custom_call.1
= control target key start
LH: loop header
LB: loop body
LE: loop exit
PB: predicated region body
PF: predicated region fallthrough
CT: control target
= control target key end

     0   :  { %7 = vsyncpa [#allocation3], 0  ;;  %s249_s0 = inlined_call_operand.hbm [shape: bf16[16,128], index: 0, kind: input, shape index: {}]   ;;  %s250_s1 = inlined_call_operand.hbm [shape: bf16[1,128], index: 1, kind: input, shape index: {}]   ;;  %s251_s2 = inlined_call_operand.hbm [shape: bf16[16,128], index: 2, kind: output, shape index: {}]  }
   0x1   :  { %8 = vsyncpa [#allocation6], 0 }
   0x2   :  { %9 = vsyncpa [#allocation4], 0  ;;  %s14_s11 = sshll.u32 %s249_s0, 4  ;;  %s214_s12 = smov [#allocation2]   ;;  %s15_s11 = int_to_ptr.hbm [resolvable:$true] %s14_s11 }
   0x3   :  { %s16_s13 = sshll.u32 %s214_s12, 4  ;;  %s28_s16 = sshll.u32 %s250_s1, 4  ;;  %s17_s13 = int_to_ptr.vmem [resolvable:$true] %s16_s13  ;;  %s29_s16 = int_to_ptr.hbm [resolvable:$true] %s28_s16 }
   0x4   :  { %s215_s17 = smov 64   ;;  %s216_s18 = smov 4  }
   0x5   :  { %22 = dma.hbm_to_vmem [thread:$0]  %s15_s11, 128, %s17_s13, [#allocation3], %s215_s17, %s215_s17, %s216_s18  }
   0x6   :  { %s217_s19 = smov [#allocation5]  }
   0x7   :  { %s30_s20 = sshll.u32 %s217_s19, 4  ;;  %s31_s20 = int_to_ptr.vmem [resolvable:$true] %s30_s20 }
   0x8   :  { %33 = dma.hbm_to_vmem [thread:$0]  %s29_s16, 16, %s31_s20, [#allocation6]  }
   0x9   :  { %208 = dma.done.wait [#allocation3], 128  }
   0xa   :  { %209 = vsyncadd [#allocation3], 4294967168 }
   0xb   :  { %210 = dma.done.wait [#allocation6], 16  }
   0xc   :  { %211 = vsyncadd [#allocation6], 4294967280  ;;  %v119_v0 = vld [vmem:[#allocation2] sm:$0xff]   ;;  %v84_v25 = vld [vmem:[#allocation5] sm:$0x1]  ;;  %s218_s0 = smov [#allocation7]  }
   0xd   :  { %v120_v1 = vunpack.c.l.bf16 %v119_v0  ;;  %v121_v3 = vunpack.c.h.bf16 %v119_v0  ;;  %v86_v28 = vpack.i.b16 %v84_v25, %v84_v25  ;;  %s102_s1 = sshll.u32 %s218_s0, 4  ;;  %s104_s23 = sshll.u32 %s251_s2, 4  ;;  %s103_s1 = int_to_ptr.vmem [resolvable:$true] %s102_s1  ;;  %s105_s23 = int_to_ptr.hbm [resolvable:$true] %s104_s23 }
   0xf   :  { %v46_v2 = vmul.f32 %v120_v1, %v120_v1  ;;  %v47_v4 = vmul.f32 %v121_v3, %v121_v3  ;;  %v88_v33 = vperm.slane %v86_v28, 0 }
  0x11   :  { %48 = vadd.xlane.f32.xlu0 %v46_v2  ;;  %v91_v37 = vunpack.c.l.bf16 %v88_v33 }
  0x19   :  { %50 = vadd.xlane.f32.xlu0 %v47_v4 }
  0x84   :  { %v49_v5 = vpop.xlane.xlu0 %48 }
  0x85   :  { %v52_v6 = vmul.f32 0.03125, %v49_v5 }
  0x87   :  { %v54_v7 = vadd.f32 1e-06, %v52_v6 }
  0x89   :  { %132 = vrsqrt.f32 %v54_v7  ;;  %vm62_vm1 = vweird.f32 %v54_v7 }
  0x8c   :  { %v51_v8 = vpop.xlane.xlu0 %50 }
  0x8d   :  { %v53_v9 = vmul.f32 0.03125, %v51_v8 }
  0x8f   :  { %v133_v10 = vpop.eup %132  ;;  %v55_v11 = vadd.f32 1e-06, %v53_v9 }
  0x90   :  { %v57_v12 = vmul.f32 %v133_v10, %v54_v7  ;;  %vm63_vm0 = vweird.f32 %v133_v10 }
  0x91   :  { %134 = vrsqrt.f32 %v55_v11  ;;  %vm64_vm2 = vmor %vm62_vm1, %vm63_vm0  ;;  %vm72_vm4 = vweird.f32 %v55_v11 }
  0x92   :  { %v58_v13 = vmul.f32 %v133_v10, %v57_v12 }
  0x94   :  { %v59_v14 = vmul.f32 0.5, %v58_v13 }
  0x96   :  { %v60_v15 = vsub.f32 1.5, %v59_v14 }
  0x97   :  { %v135_v16 = vpop.eup %134 }
  0x98   :  { %v61_v17 = vmul.f32 %v133_v10, %v60_v15  ;;  %v67_v18 = vmul.f32 %v135_v16, %v55_v11  ;;  %vm73_vm3 = vweird.f32 %v135_v16 }
  0x99   :  { %vm74_vm5 = vmor %vm72_vm4, %vm73_vm3 }
  0x9a   :  { %v65_v19 = vsel %vm64_vm2, %v133_v10, %v61_v17  ;;  %v68_v20 = vmul.f32 %v135_v16, %v67_v18 }
  0x9b   :  { %v76_v21 = vpack.c.bf16 %v65_v19, %v65_v19 }
  0x9c   :  { %v69_v22 = vmul.f32 0.5, %v68_v20 }
  0x9d   :  { %v78_v23 = vunpack.c.l.bf16 %v76_v21 }
  0x9e   :  { %v70_v24 = vsub.f32 1.5, %v69_v22 }
  0x9f   :  { %v80_v27 = vmul.f32 %v120_v1, %v78_v23 }
  0xa0   :  { %v71_v26 = vmul.f32 %v135_v16, %v70_v24 }
  0xa1   :  { %v82_v32 = vpack.c.bf16 %v80_v27, %v80_v27 }
  0xa2   :  { %v75_v29 = vsel %vm74_vm5, %v135_v16, %v71_v26 }
  0xa3   :  { %v77_v30 = vpack.c.bf16 %v75_v29, %v75_v29  ;;  %v89_v36 = vunpack.c.l.bf16 %v82_v32 }
  0xa5   :  { %v79_v31 = vunpack.c.l.bf16 %v77_v30  ;;  %v92_v39 = vmul.f32 %v91_v37, %v89_v36 }
  0xa7   :  { %v81_v34 = vmul.f32 %v121_v3, %v79_v31 }
  0xa9   :  { %v83_v35 = vpack.c.bf16 %v81_v34, %v81_v34 }
  0xab   :  { %v90_v38 = vunpack.c.l.bf16 %v83_v35 }
  0xad   :  { %v93_v40 = vmul.f32 %v91_v37, %v90_v38 }
  0xaf   :  { %v125_v41 = vpack.c.bf16 %v93_v40, %v92_v39 }
  0xb1   :  { %126 = vst [vmem:[#allocation7] sm:$0xff] %v125_v41  }
  0xb2   :  { %110 = dma.vmem_to_hbm [thread:$0]  %s103_s1, 128, %s105_s23, [#allocation4], %s215_s17, %s215_s17, %s216_s18  }
  0xb3   :  { %212 = dma.done.wait [#allocation4], 128  }
  0xb4   :  { %213 = vsyncadd [#allocation4], 4294967168 }
  0xb5   :  { %115 = vsyncpa [#allocation3], 1 }
  0xb6   :  { %116 = vsyncpa [#allocation6], 1 }
  0xb7   :  { %117 = vsyncpa [#allocation4], 1 }

</bundles_post_ra>
